<compile_context>
chip_gen: v6e
topology: v6e:2x2x1
jax: 0.10.0
libtpu: 0.0.40
codegen_flags: <defaults>
</compile_context>

<pallas_src>
import math

import jax
import jax.numpy as jnp
from jax.experimental import pallas as pl
from jax.experimental.pallas import tpu as pltpu

_MIB = 1024 * 1024
_SQRT_2_OVER_PI = math.sqrt(2.0 / math.pi)


def _gelu_kernel(x_ref, o_ref):
    """Tanh-approx GELU: 0.5*x*(1 + tanh(sqrt(2/pi)*(x + 0.044715*x^3)))."""
    x = x_ref[...]
    # Sub-f32 dtypes (bf16/f16/fp8): do the cubic + tanh in f32 and cast once
    # at the store.  The kernel is HBM-bound so the extra VPU/EUP work is free,
    # and it matches PyTorch's f32 opmath for half dtypes (and what v5e
    # hardware executes anyway).
    compute_dtype = x.dtype if jnp.dtype(x.dtype).itemsize >= 4 else jnp.float32
    xf = x.astype(compute_dtype)

    c = jnp.asarray(_SQRT_2_OVER_PI, compute_dtype)
    k = jnp.asarray(0.044715, compute_dtype)
    half = jnp.asarray(0.5, compute_dtype)

    half_x = half * xf                      # reuse 0.5*x twice
    x2 = xf * xf                            # x^3 as x * x2 (one fewer mul)
    inner = c * (xf + k * (xf * x2))
    o_ref[...] = (half_x + half_x * jnp.tanh(inner)).astype(o_ref.dtype)


_LANE_CANDIDATES = (8192, 4096, 2048, 1024, 512, 384, 256, 128)


def _pick_lane_width(n_total, hidden, min_rows):
    """Choose a lane-dense trailing dim for the flattened activation.

    GELU is elementwise, so any re-factorization of the flat buffer is valid.
    Output last dims below / not a multiple of 128 lower to masked partial
    stores, so prefer wide multiples of 128.
    """
    if hidden >= 512 and hidden % 128 == 0:
        return hidden
    # Prefer widths that still leave at least one full sublane tile of rows.
    for cand in _LANE_CANDIDATES:
        if n_total % cand == 0 and n_total // cand >= min_rows:
            return cand
    # Otherwise accept any dividing lane-dense width.
    for cand in _LANE_CANDIDATES:
        if n_total % cand == 0:
            return cand
    # Fall back to the original trailing dim (full-dim blocks are always legal).
    return max(hidden, 1)


def gelu_pallas(x, *, block_bytes_cap=None, vmem_limit_bytes=None):
    """Tanh-approximation GELU, matching the PyTorch module."""
    orig_shape = x.shape
    n_total = x.size
    if n_total == 0:
        return x

    elem_bytes = jnp.dtype(x.dtype).itemsize
    # Packed-tile minimum along the sublane (second-to-last) axis.
    min_rows = {4: 8, 2: 16, 1: 32}.get(elem_bytes, 8)

    # ---- Generation-aware VMEM budget (v5e/v6e: 128 MiB, v7x: 64 MiB). ----
    try:
        vmem_cap = int(pltpu.get_tpu_info().vmem_capacity_bytes)
    except Exception:  # conservative (v7x-sized) default if the query fails
        vmem_cap = 64 * _MIB
    if block_bytes_cap is None:
        # in + out, each double-buffered => 4 live blocks; keep that under
        # ~50% of physical VMEM (=> 8 MiB blocks on v7x, 16 MiB on v5e/v6e).
        block_bytes_cap = min(16 * _MIB, max(2 * _MIB, vmem_cap // 8))
    if vmem_limit_bytes is None:
        vmem_limit_bytes = min(vmem_cap * 3 // 4, 5 * block_bytes_cap)

    hidden = orig_shape[-1] if x.ndim >= 1 else 1
    lane_width = _pick_lane_width(n_total, hidden, min_rows)
    rows = n_total // lane_width
    x2d = x.reshape(rows, lane_width)

    # ---- Lane-axis blocking if even one sublane tile of rows busts the cap.
    if lane_width > 128 and min_rows * lane_width * elem_bytes > block_bytes_cap:
        tl = (block_bytes_cap // (min_rows * elem_bytes)) // 128 * 128
        tl = max(128, min(tl, lane_width))
    else:
        tl = lane_width

    # ---- Row tile: largest multiple of min_rows under the block-size cap.
    tr = (block_bytes_cap // max(tl * elem_bytes, 1)) // min_rows * min_rows
    tr = max(tr, min_rows)
    rows_up = ((rows + min_rows - 1) // min_rows) * min_rows
    tr = min(tr, rows_up)

    # ---- Keep >= ~4 grid steps for medium inputs so the DMA pipeline and
    # v7x's two TensorCores ("parallel" semantics) both have work to do.
    if pl.cdiv(lane_width, tl) * pl.cdiv(rows, tr) < 4 and rows_up > 2 * min_rows:
        target_row_blocks = min(4, rows_up // min_rows)
        tr_small = -(-rows // target_row_blocks)
        tr_small = ((tr_small + min_rows - 1) // min_rows) * min_rows
        tr = min(tr, max(min_rows, tr_small))

    # Ragged tails (rows % tr, lane_width % tl) are masked by Pallas: no
    # jnp.pad / out[:rows] slice => no extra full read+write HBM passes.
    grid = (pl.cdiv(rows, tr), pl.cdiv(lane_width, tl))

    out = pl.pallas_call(
        _gelu_kernel,
        out_shape=jax.ShapeDtypeStruct((rows, lane_width), x.dtype),
        grid_spec=pltpu.PrefetchScalarGridSpec(
            num_scalar_prefetch=0,
            grid=grid,
            in_specs=[pl.BlockSpec((tr, tl), lambda i, j: (i, j))],
            out_specs=pl.BlockSpec((tr, tl), lambda i, j: (i, j)),
        ),
        compiler_params=pltpu.CompilerParams(
            dimension_semantics=("parallel", "parallel"),
            vmem_limit_bytes=int(vmem_limit_bytes),
        ),
    )(x2d)

    return out.reshape(orig_shape)


def gelu_reference(x):
    xf = x.astype(jnp.float32)
    c = jnp.float32(_SQRT_2_OVER_PI)
    y = 0.5 * xf * (1.0 + jnp.tanh(c * (xf + 0.044715 * xf ** 3)))
    return y.astype(x.dtype)


if __name__ == "__main__":
    key = jax.random.PRNGKey(0)

    # Small, module-consistent shape: batch=2, seq=8, hidden=128.
    x = jax.random.normal(key, (2, 8, 128), dtype=jnp.float32)
    y = gelu_pallas(x)
    jax.block_until_ready(y)
    assert y.shape == x.shape and y.dtype == x.dtype
    assert jnp.allclose(y, gelu_reference(x), atol=1e-5, rtol=1e-5)

    # Non-multiple row count: exercises the ragged (masked) tail-block path.
    x_odd = jax.random.normal(key, (3, 5, 128), dtype=jnp.float32)
    y_odd = gelu_pallas(x_odd)
    jax.block_until_ready(y_odd)
    assert jnp.allclose(y_odd, gelu_reference(x_odd), atol=1e-5, rtol=1e-5)

    # bf16: kernel computes in f32 internally and casts once at the store.
    x_bf16 = jax.random.normal(key, (2, 8, 256), dtype=jnp.bfloat16)
    y_bf16 = gelu_pallas(x_bf16)
    jax.block_until_ready(y_bf16)
    assert y_bf16.shape == x_bf16.shape and y_bf16.dtype == jnp.bfloat16
    assert jnp.allclose(y_bf16.astype(jnp.float32),
                        gelu_reference(x_bf16).astype(jnp.float32),
                        atol=1e-2, rtol=1e-2)

    print("KERNEL_OK")
</pallas_src>

<mosaic_0001>
module attributes {stable_mosaic.version = 11 : i64} {
  func.func @_gelu_kernel(%arg0: i32, %arg1: i32, %arg2: memref<8x256xf32, #tpu.memory_space<vmem>>, %arg3: memref<8x256xf32, #tpu.memory_space<vmem>>) attributes {dimension_semantics = [#tpu.dimension_semantics<parallel>, #tpu.dimension_semantics<parallel>], iteration_bounds = array<i64: 1, 1>, scalar_prefetch = 0 : i64, scratch_operands = 0 : i64, tpu.core_type = #tpu.core_type<tc>, window_params = [{transform_indices = @transform_0, window_bounds = array<i64: 8, 256>}, {transform_indices = @transform_1, window_bounds = array<i64: 8, 256>}]} {
    %c0 = arith.constant 0 : index
    %c0_0 = arith.constant 0 : index
    %0 = vector.load %arg2[%c0, %c0_0] : memref<8x256xf32, #tpu.memory_space<vmem>>, vector<8x256xf32>
    %cst = arith.constant 5.000000e-01 : f32
    %1 = vector.broadcast %cst : f32 to vector<8x256xf32>
    %2 = arith.mulf %1, %0 : vector<8x256xf32>
    %3 = arith.mulf %0, %0 : vector<8x256xf32>
    %4 = arith.mulf %0, %3 : vector<8x256xf32>
    %cst_1 = arith.constant 4.471500e-02 : f32
    %5 = vector.broadcast %cst_1 : f32 to vector<8x256xf32>
    %6 = arith.mulf %5, %4 : vector<8x256xf32>
    %7 = arith.addf %0, %6 : vector<8x256xf32>
    %cst_2 = arith.constant 0.797884583 : f32
    %8 = vector.broadcast %cst_2 : f32 to vector<8x256xf32>
    %9 = arith.mulf %8, %7 : vector<8x256xf32>
    %10 = math.tanh %9 : vector<8x256xf32>
    %11 = arith.mulf %2, %10 : vector<8x256xf32>
    %12 = arith.addf %2, %11 : vector<8x256xf32>
    %c0_3 = arith.constant 0 : index
    %c0_4 = arith.constant 0 : index
    %13 = vector.load %arg3[%c0_3, %c0_4] : memref<8x256xf32, #tpu.memory_space<vmem>>, vector<8x256xf32>
    tpu.vector_store %arg3[%c0_3, %c0_4], %12 {strides = array<i32>} : memref<8x256xf32, #tpu.memory_space<vmem>>, vector<8x256xf32>,
    return
  }
  func.func @transform_0(%arg0: i32, %arg1: i32) -> (i32, i32) {
    %c0_i32 = arith.constant 0 : i32
    return %arg0, %arg1 : i32, i32
  }
  func.func @transform_1(%arg0: i32, %arg1: i32) -> (i32, i32) {
    %c0_i32 = arith.constant 0 : i32
    return %arg0, %arg1 : i32, i32
  }
}

</mosaic_0001>

<bundles_post_ra>
// kernel: tpu_custom_call.1
= control target key start
LH: loop header
LB: loop body
LE: loop exit
PB: predicated region body
PF: predicated region fallthrough
CT: control target
= control target key end

     0   :  { %6 = vsyncpa [#allocation3], 0  ;;  %s126_s0 = inlined_call_operand.hbm [shape: f32[8,256], index: 0, kind: input, shape index: {}]   ;;  %s127_s1 = inlined_call_operand.hbm [shape: f32[8,256], index: 1, kind: output, shape index: {}]  }
   0x1   :  { %7 = vsyncpa [#allocation4], 0  ;;  %s108_s6 = smov [#allocation2]  }
   0x2   :  { %s14_s7 = sshll.u32 %s108_s6, 4  ;;  %s15_s7 = int_to_ptr.vmem [resolvable:$true] %s14_s7 }
   0x3   :  { %s72_s8 = scalar_lea.vmem %s15_s7, 256  ;;  %p77_p1 = scmp.lt.s32.totalorder %s15_s7, %s15_s7 }
   0x4   :  { %p73_p0 = scmp.ne.s32.totalorder %s15_s7, %s72_s8  ;;  %p78_p2 = scmp.lt.s32.totalorder %s72_s8, %s72_s8 }
   0x6   :  { %p79_p3 = por %p78_p2, %p77_p1 }
   0x8   :  { %p80_p4 = pnand %p79_p3, %p73_p0 }
   0xa   :  { %83 = shalt.err (!%p80_p4)
}
   0xb   :  { %17 = dma.hbm_to_vmem [thread:$0]  %s126_s0, 256, %s15_s7, [#allocation3]  }
   0xc   :  { %104 = dma.done.wait [#allocation3], 256  }
   0xd   :  { %105 = vsyncadd [#allocation3], 4294967040  ;;  %v21_v0 = vld [vmem:[#allocation2] sm:$0xff]  ;;  %v22_v1 = vld [vmem:[#allocation2 + $0x8] sm:$0xff]  ;;  %s109_s0 = smov [#allocation5]  }
   0xe   :  { %v25_v2 = vmul.f32 %v21_v0, %v21_v0  ;;  %v26_v3 = vmul.f32 %v22_v1, %v22_v1  ;;  %v23_v12 = vmul.f32 0.5, %v21_v0  ;;  %v24_v13 = vmul.f32 0.5, %v22_v1  ;;  %s49_s11 = sshll.u32 %s109_s0, 4  ;;  %s50_s11 = int_to_ptr.vmem [resolvable:$true] %s49_s11 }
   0xf   :  { %s84_s12 = scalar_lea.vmem %s50_s11, 256  ;;  %p89_p6 = scmp.lt.s32.totalorder %s50_s11, %s50_s11 }
  0x10   :  { %v27_v4 = vmul.f32 %v25_v2, %v21_v0  ;;  %v28_v5 = vmul.f32 %v26_v3, %v22_v1  ;;  %p85_p5 = scmp.ne.s32.totalorder %s50_s11, %s84_s12  ;;  %p90_p7 = scmp.lt.s32.totalorder %s84_s12, %s84_s12 }
  0x12   :  { %v29_v6 = vmul.f32 0.044715, %v27_v4  ;;  %v30_v7 = vmul.f32 0.044715, %v28_v5  ;;  %p91_p8 = por %p90_p7, %p89_p6 }
  0x14   :  { %v31_v8 = vadd.f32 %v29_v6, %v21_v0  ;;  %v32_v9 = vadd.f32 %v30_v7, %v22_v1  ;;  %p92_p9 = pnand %p91_p8, %p85_p5 }
  0x16   :  { %v33_v10 = vmul.f32 0.7978846, %v31_v8  ;;  %v34_v11 = vmul.f32 0.7978846, %v32_v9 }
  0x18   :  { %60 = vtanh.f32 %v33_v10 }
  0x19   :  { %62 = vtanh.f32 %v34_v11 }
  0x25   :  { %v61_v14 = vpop.eup %60 }
  0x26   :  { %v63_v15 = vpop.eup %62  ;;  %v37_v16 = vmul.f32 %v61_v14, %v23_v12 }
  0x27   :  { %v38_v17 = vmul.f32 %v63_v15, %v24_v13 }
  0x28   :  { %v39_v18 = vadd.f32 %v37_v16, %v23_v12 }
  0x29   :  { %v40_v19 = vadd.f32 %v38_v17, %v24_v13 }
  0x2a   :  { %41 = vst [vmem:[#allocation5] sm:$0xff] %v39_v18 }
  0x2b   :  { %42 = vst [vmem:[#allocation5 + $0x8] sm:$0xff] %v40_v19 }
  0x2c   :  { %95 = shalt.err (!%p92_p9)
}
  0x2d   :  { %52 = dma.vmem_to_hbm [thread:$0]  %s50_s11, 256, %s127_s1, [#allocation4]  }
  0x2e   :  { %106 = dma.done.wait [#allocation4], 256  }
  0x2f   :  { %107 = vsyncadd [#allocation4], 4294967040 }
  0x30   :  { %56 = vsyncpa [#allocation3], 1 }
  0x31   :  { %57 = vsyncpa [#allocation4], 1 }

</bundles_post_ra>
